<compile_context>
chip_gen: v7x
topology: tpu7x:2x2x1
jax: 0.10.0
libtpu: 0.0.40
codegen_flags: <defaults>
</compile_context>

<pallas_src>
import functools
import math

import jax
import jax.numpy as jnp
from jax.experimental import pallas as pl
from jax.experimental.pallas import tpu as pltpu


def _round_up(x, m):
    return (x + m - 1) // m * m


def _aam_ce_kernel(emb_ref, tgt_ref, w_ref, loss_ref,
                   xn_ref, m_ref, l_ref, t_ref,
                   *, K, C, Cp, cos_m, sin_m, th, mm, scale, block_c):
    # emb_ref: [Bt, D] f32    tgt_ref: [Bt, 1] i32
    # w_ref:   [1, D, K*bc] bf16 (L2-normalized, sub-center k in lanes k*bc..)
    # loss_ref:[Bt, 1] f32 (per-sample CE, written at the last class tile)
    j = pl.program_id(1)

    # ---- init per-(B-tile) state at the first class tile --------------------
    @pl.when(j == 0)
    def _():
        x = emb_ref[...].astype(jnp.float32)
        inv = jax.lax.rsqrt(jnp.maximum(jnp.sum(x * x, axis=-1, keepdims=True),
                                        1e-24))
        # Fold the ArcFace scale into the normalized embedding: the MXU then
        # produces s*cosine directly (removes a full-tile VPU multiply).
        xn_ref[...] = (x * (inv * scale)).astype(jnp.bfloat16)
        m_ref[...] = jnp.full(m_ref.shape, -jnp.inf, dtype=jnp.float32)
        l_ref[...] = jnp.zeros(l_ref.shape, dtype=jnp.float32)
        t_ref[...] = jnp.zeros(t_ref.shape, dtype=jnp.float32)

    xn = xn_ref[...]                                         # [Bt, D] bf16 = s*x_hat

    # ---- one fused MXU push over all K sub-centers ---------------------------
    z = jnp.dot(xn, w_ref[0], preferred_element_type=jnp.float32)  # [Bt, K*bc]
    zmax = z[:, 0:block_c]                                   # s * cosine (sub-center 0)
    for k in range(1, K):                                    # K is static & small
        zmax = jnp.maximum(zmax, z[:, k * block_c:(k + 1) * block_c])

    Bt, Ct = zmax.shape
    tgt = tgt_ref[...]                                       # [Bt, 1] i32
    col = j * block_c + jax.lax.broadcasted_iota(jnp.int32, (Bt, Ct), 1)
    is_tgt = col == tgt                                      # [Bt, Ct]

    # ---- ArcFace margin on the target column only ([Bt,1] math) -------------
    z_t = jnp.sum(jnp.where(is_tgt, zmax, 0.0), axis=-1, keepdims=True)  # s*cos_t
    cos_t = z_t * (1.0 / scale)
    sin_t = jnp.sqrt(jnp.clip(1.0 - cos_t * cos_t, 0.0, 1.0))
    phi_t = cos_t * cos_m - sin_t * sin_m
    phi_t = jnp.where(cos_t > th, phi_t, cos_t - mm)
    logit_t = scale * phi_t                                  # [Bt, 1]

    logits = jnp.where(is_tgt, logit_t, zmax)                # [Bt, Ct]
    if Cp != C:
        # Padded class columns only exist when Cp != C (and only affect the
        # last tile); mask them to -inf before the logsumexp.
        logits = jnp.where(col < C, logits, -jnp.inf)

    # ---- online logsumexp over the class axis --------------------------------
    m_prev = m_ref[...]
    m_new = jnp.maximum(m_prev, jnp.max(logits, axis=-1, keepdims=True))
    alpha = jnp.exp(m_prev - m_new)
    l_ref[...] = alpha * l_ref[...] + jnp.sum(jnp.exp(logits - m_new),
                                              axis=-1, keepdims=True)
    m_ref[...] = m_new

    # Accumulate the target logit (cheap [Bt,1] gate instead of a full-tile sum).
    in_tile = jnp.logical_and(tgt >= j * block_c, tgt < (j + 1) * block_c)
    t_ref[...] = t_ref[...] + jnp.where(in_tile, logit_t, 0.0)

    # ---- finalize per-sample cross-entropy at the last class tile ------------
    @pl.when(j == pl.num_programs(1) - 1)
    def _():
        lse = m_ref[...] + jnp.log(l_ref[...])
        loss_ref[...] = lse - t_ref[...]                     # [Bt, 1]


def pyannote_aamsoftmax_loss(embeddings, weight, targets, *, K, margin, scale,
                             block_b=256, block_c=1024):
    """embeddings [B, D] f32, weight [C*K, D] f32 (row j -> class j//K,
    sub-center j%K), targets [B] int. Returns scalar mean cross-entropy loss."""
    B, D = embeddings.shape
    CK, D2 = weight.shape
    assert D == D2 and CK % K == 0
    C = CK // K

    # Tile / pad so every block is (8, 128)-friendly.
    bb = min(block_b, _round_up(B, 8))        # nB == 1 whenever the batch fits
    bc = min(block_c, _round_up(C, 128))
    Bp = _round_up(B, bb)
    Cp = _round_up(C, bc)
    nB, nC = Bp // bb, Cp // bc

    # Hoisted out of the kernel (do ONCE per call / persist across steps):
    # L2-normalize every sub-center row, pad the class dim, reorder to the
    # fused [nC, D, K*bc] bf16 layout (sub-center k in lanes [k*bc,(k+1)*bc)).
    w = weight.astype(jnp.float32)
    w = w * jax.lax.rsqrt(jnp.maximum(jnp.sum(w * w, axis=1, keepdims=True), 1e-24))
    w_ckd = w.reshape(C, K, D).astype(jnp.bfloat16)
    w_ckd = jnp.pad(w_ckd, ((0, Cp - C), (0, 0), (0, 0)))
    w_fused = jnp.transpose(w_ckd.reshape(nC, bc, K, D), (0, 3, 2, 1))
    w_fused = w_fused.reshape(nC, D, K * bc)

    emb = jnp.pad(embeddings.astype(jnp.float32), ((0, Bp - B), (0, 0)))
    tgt = jnp.pad(targets.astype(jnp.int32), (0, Bp - B)).reshape(Bp, 1)

    kernel = functools.partial(
        _aam_ce_kernel,
        K=K, C=C, Cp=Cp,
        cos_m=math.cos(margin), sin_m=math.sin(margin),
        th=math.cos(math.pi - margin), mm=math.sin(math.pi - margin) * margin,
        scale=float(scale), block_c=bc)

    # VMEM budget: double-buffered input/output tiles + scratch + live
    # [Bt, K*bc]/[Bt, bc] f32 temporaries; capped at 48 MiB (safe for v7x's
    # 64 MiB physical VMEM; v5e/v6e have 128 MiB so this is conservative).
    est = (2 * (K * D * bc * 2 + bb * D * 4 + 2 * bb * 128 * 4)
           + bb * D * 2 + 3 * bb * 128 * 4
           + (K + 8) * bb * bc * 4)
    vmem_limit = int(min(max(2 * est, 32 * 1024 * 1024), 48 * 1024 * 1024))

    per_sample = pl.pallas_call(
        kernel,
        out_shape=jax.ShapeDtypeStruct((Bp, 1), jnp.float32),
        grid_spec=pltpu.PrefetchScalarGridSpec(
            num_scalar_prefetch=0,
            grid=(nB, nC),                                 # class (reduction) axis last
            in_specs=[
                pl.BlockSpec((bb, D), lambda i, j: (i, 0)),           # embeddings
                pl.BlockSpec((bb, 1), lambda i, j: (i, 0)),           # targets
                pl.BlockSpec((1, D, K * bc), lambda i, j: (j, 0, 0)),  # fused bf16 W
            ],
            out_specs=pl.BlockSpec((bb, 1), lambda i, j: (i, 0)),     # per-sample CE
            scratch_shapes=[
                pltpu.VMEM((bb, D), jnp.bfloat16),   # s * normalized embeddings
                pltpu.VMEM((bb, 1), jnp.float32),    # running row max
                pltpu.VMEM((bb, 1), jnp.float32),    # running sum-exp
                pltpu.VMEM((bb, 1), jnp.float32),    # target logit
            ]),
        compiler_params=pltpu.CompilerParams(
            dimension_semantics=("parallel", "arbitrary"),
            vmem_limit_bytes=vmem_limit),
    )(emb, tgt, w_fused)

    # Mean over the REAL batch only (padded rows excluded).
    return jnp.sum(per_sample[:B, 0]) / B


def _reference_loss(embeddings, weight, targets, *, K, margin, scale):
    """Pure-JAX f32 reference of the PyTorch module's forward."""
    x = embeddings / jnp.linalg.norm(embeddings, axis=1, keepdims=True)
    w = weight / jnp.linalg.norm(weight, axis=1, keepdims=True)
    cosine = x @ w.T                                   # [B, C*K]
    B = x.shape[0]
    C = weight.shape[0] // K
    cosine = jnp.max(cosine.reshape(B, C, K), axis=2)  # max over sub-centers
    sine = jnp.sqrt(jnp.clip(1.0 - cosine ** 2, 0.0, 1.0))
    phi = cosine * math.cos(margin) - sine * math.sin(margin)
    phi = jnp.where(cosine > math.cos(math.pi - margin), phi,
                    cosine - math.sin(math.pi - margin) * margin)
    one_hot = jax.nn.one_hot(targets, C, dtype=cosine.dtype)
    logits = scale * (one_hot * phi + (1.0 - one_hot) * cosine)
    logp = jax.nn.log_softmax(logits, axis=-1)
    return -jnp.mean(jnp.take_along_axis(logp, targets[:, None], axis=1))


if __name__ == "__main__":
    B, D, C, K = 8, 32, 16, 2          # batch, embed_dim, num_classes, sub-centers
    margin, scale = 0.2, 30.0

    key = jax.random.PRNGKey(0)
    k_emb, k_w, k_tgt = jax.random.split(key, 3)

    embeddings = jax.random.normal(k_emb, (B, D), dtype=jnp.float32)
    # deterministic xavier_uniform-style init for the [C*K, D] classifier weight
    bound = math.sqrt(6.0 / (D + C * K))
    weight = jax.random.uniform(
        k_w, (C * K, D), minval=-bound, maxval=bound, dtype=jnp.float32)
    targets = jax.random.randint(k_tgt, (B,), 0, C, dtype=jnp.int32)

    loss = pyannote_aamsoftmax_loss(
        embeddings, weight, targets, K=K, margin=margin, scale=scale)
    jax.block_until_ready(loss)
    assert bool(jnp.isfinite(loss)), "loss is not finite"

    ref = _reference_loss(embeddings, weight, targets,
                          K=K, margin=margin, scale=scale)
    # bf16 weight/embedding stream amplified by scale=30 -> allow loose tol.
    assert abs(float(loss) - float(ref)) <= 0.05 + 0.05 * abs(float(ref)), \
        f"mismatch: kernel={float(loss)} ref={float(ref)}"
    print("KERNEL_OK")
</pallas_src>

<mosaic_0001>
module attributes {stable_mosaic.version = 11 : i64} {
  func.func @_aam_ce_kernel(%arg0: i32, %arg1: i32, %arg2: memref<8x32xf32, #tpu.memory_space<vmem>>, %arg3: memref<8x1xi32, #tpu.memory_space<vmem>>, %arg4: memref<1x32x256xbf16, #tpu.memory_space<vmem>>, %arg5: memref<8x1xf32, #tpu.memory_space<vmem>>, %arg6: memref<8x32xbf16, #tpu.memory_space<vmem>>, %arg7: memref<8x1xf32, #tpu.memory_space<vmem>>, %arg8: memref<8x1xf32, #tpu.memory_space<vmem>>, %arg9: memref<8x1xf32, #tpu.memory_space<vmem>>) attributes {dimension_semantics = [#tpu.dimension_semantics<parallel>, #tpu.dimension_semantics<arbitrary>], iteration_bounds = array<i64: 1, 1>, scalar_prefetch = 0 : i64, scratch_operands = 4 : i64, tpu.core_type = #tpu.core_type<tc>, window_params = [{transform_indices = @transform_0, window_bounds = array<i64: 8, 32>}, {transform_indices = @transform_1, window_bounds = array<i64: 8, 1>}, {transform_indices = @transform_2, window_bounds = array<i64: 1, 32, 256>}, {transform_indices = @transform_3, window_bounds = array<i64: 8, 1>}]} {
    %c0_i32 = arith.constant 0 : i32
    %0 = arith.cmpi eq, %arg1, %c0_i32 : i32
    %1 = arith.extui %0 : i1 to i32
    %c0_i32_0 = arith.constant 0 : i32
    %2 = arith.cmpi ne, %1, %c0_i32_0 : i32
    scf.if %2 {
      %c0_38 = arith.constant 0 : index
      %c0_39 = arith.constant 0 : index
      %82 = vector.load %arg2[%c0_38, %c0_39] : memref<8x32xf32, #tpu.memory_space<vmem>>, vector<8x32xf32>
      %83 = arith.mulf %82, %82 : vector<8x32xf32>
      %cst_40 = arith.constant dense<0.000000e+00> : vector<8xf32>
      %84 = vector.multi_reduction <add>, %83, %cst_40 [1] : vector<8x32xf32> to vector<8xf32>
      %85 = vector.shape_cast %84 : vector<8xf32> to vector<8x1xf32>
      %cst_41 = arith.constant 1.000000e-24 : f32
      %86 = vector.broadcast %cst_41 : f32 to vector<8x1xf32>
      %87 = arith.maximumf %85, %86 : vector<8x1xf32>
      %88 = math.rsqrt %87 : vector<8x1xf32>
      %cst_42 = arith.constant 3.000000e+01 : f32
      %89 = vector.broadcast %cst_42 : f32 to vector<8x1xf32>
      %90 = arith.mulf %88, %89 : vector<8x1xf32>
      %91 = vector.broadcast %90 : vector<8x1xf32> to vector<8x32xf32>
      %92 = arith.mulf %82, %91 : vector<8x32xf32>
      %93 = arith.truncf %92 : vector<8x32xf32> to vector<8x32xbf16>
      %c0_43 = arith.constant 0 : index
      %c0_44 = arith.constant 0 : index
      %94 = vector.load %arg6[%c0_43, %c0_44] : memref<8x32xbf16, #tpu.memory_space<vmem>>, vector<8x32xbf16>
      tpu.vector_store %arg6[%c0_43, %c0_44], %93 {strides = array<i32>} : memref<8x32xbf16, #tpu.memory_space<vmem>>, vector<8x32xbf16>,
      %cst_45 = arith.constant 0xFF800000 : f32
      %95 = vector.broadcast %cst_45 : f32 to vector<8x1xf32>
      %c0_46 = arith.constant 0 : index
      %c0_47 = arith.constant 0 : index
      %96 = vector.load %arg7[%c0_46, %c0_47] : memref<8x1xf32, #tpu.memory_space<vmem>>, vector<8x1xf32>
      tpu.vector_store %arg7[%c0_46, %c0_47], %95 {strides = array<i32>} : memref<8x1xf32, #tpu.memory_space<vmem>>, vector<8x1xf32>,
      %cst_48 = arith.constant 0.000000e+00 : f32
      %97 = vector.broadcast %cst_48 : f32 to vector<8x1xf32>
      %c0_49 = arith.constant 0 : index
      %c0_50 = arith.constant 0 : index
      %98 = vector.load %arg8[%c0_49, %c0_50] : memref<8x1xf32, #tpu.memory_space<vmem>>, vector<8x1xf32>
      tpu.vector_store %arg8[%c0_49, %c0_50], %97 {strides = array<i32>} : memref<8x1xf32, #tpu.memory_space<vmem>>, vector<8x1xf32>,
      %cst_51 = arith.constant 0.000000e+00 : f32
      %99 = vector.broadcast %cst_51 : f32 to vector<8x1xf32>
      %c0_52 = arith.constant 0 : index
      %c0_53 = arith.constant 0 : index
      %100 = vector.load %arg9[%c0_52, %c0_53] : memref<8x1xf32, #tpu.memory_space<vmem>>, vector<8x1xf32>
      tpu.vector_store %arg9[%c0_52, %c0_53], %99 {strides = array<i32>} : memref<8x1xf32, #tpu.memory_space<vmem>>, vector<8x1xf32>,
    } else {
    }
    %c0 = arith.constant 0 : index
    %c0_1 = arith.constant 0 : index
    %3 = vector.load %arg6[%c0, %c0_1] : memref<8x32xbf16, #tpu.memory_space<vmem>>, vector<8x32xbf16>
    %c0_2 = arith.constant 0 : index
    %c0_3 = arith.constant 0 : index
    %c0_4 = arith.constant 0 : index
    %4 = vector.load %arg4[%c0_2, %c0_3, %c0_4] : memref<1x32x256xbf16, #tpu.memory_space<vmem>>, vector<1x32x256xbf16>
    %5 = vector.shape_cast %4 : vector<1x32x256xbf16> to vector<32x256xbf16>
    %cst = arith.constant dense<0.000000e+00> : vector<8x256xf32>
    %6 = tpu.matmul %3, %5, %cst {dimension_numbers = #tpu.dot_dimension_numbers<[1], [0], [0], [1], [0, 0, 1, 1], [], []>} : vector<8x32xbf16>, vector<32x256xbf16>, vector<8x256xf32> -> vector<8x256xf32>
    %7 = vector.extract_strided_slice %6 {offsets = [0, 0], sizes = [8, 128], strides = [1, 1]} : vector<8x256xf32> to vector<8x128xf32>
    %8 = vector.extract_strided_slice %6 {offsets = [0, 128], sizes = [8, 128], strides = [1, 1]} : vector<8x256xf32> to vector<8x128xf32>
    %9 = arith.maximumf %7, %8 : vector<8x128xf32>
    %c0_5 = arith.constant 0 : index
    %c0_6 = arith.constant 0 : index
    %10 = vector.load %arg3[%c0_5, %c0_6] : memref<8x1xi32, #tpu.memory_space<vmem>>, vector<8x1xi32>
    %c128_i32 = arith.constant 128 : i32
    %11 = arith.muli %arg1, %c128_i32 : i32
    %12 = tpu.iota {dimensions = array<i32: 1>} : vector<8x128xi32>
    %13 = vector.broadcast %11 : i32 to vector<8x128xi32>
    %14 = arith.addi %13, %12 : vector<8x128xi32>
    %15 = vector.broadcast %10 : vector<8x1xi32> to vector<8x128xi32>
    %16 = arith.cmpi eq, %14, %15 : vector<8x128xi32>
    %cst_7 = arith.constant 0.000000e+00 : f32
    %17 = vector.broadcast %cst_7 : f32 to vector<8x128xf32>
    %18 = arith.select %16, %9, %17 : vector<8x128xi1>, vector<8x128xf32>
    %cst_8 = arith.constant dense<0.000000e+00> : vector<8xf32>
    %19 = vector.multi_reduction <add>, %18, %cst_8 [1] : vector<8x128xf32> to vector<8xf32>
    %20 = vector.shape_cast %19 : vector<8xf32> to vector<8x1xf32>
    %cst_9 = arith.constant 0.0333333351 : f32
    %21 = vector.broadcast %cst_9 : f32 to vector<8x1xf32>
    %22 = arith.mulf %20, %21 : vector<8x1xf32>
    %23 = arith.mulf %22, %22 : vector<8x1xf32>
    %cst_10 = arith.constant 1.000000e+00 : f32
    %24 = vector.broadcast %cst_10 : f32 to vector<8x1xf32>
    %25 = arith.subf %24, %23 : vector<8x1xf32>
    %cst_11 = arith.constant 0.000000e+00 : f32
    %cst_12 = arith.constant 1.000000e+00 : f32
    %26 = vector.broadcast %cst_11 : f32 to vector<8x1xf32>
    %27 = arith.maximumf %26, %25 : vector<8x1xf32>
    %28 = vector.broadcast %cst_12 : f32 to vector<8x1xf32>
    %29 = arith.minimumf %28, %27 : vector<8x1xf32>
    %30 = math.sqrt %29 : vector<8x1xf32>
    %cst_13 = arith.constant 0.980066597 : f32
    %31 = vector.broadcast %cst_13 : f32 to vector<8x1xf32>
    %32 = arith.mulf %22, %31 : vector<8x1xf32>
    %cst_14 = arith.constant 0.198669329 : f32
    %33 = vector.broadcast %cst_14 : f32 to vector<8x1xf32>
    %34 = arith.mulf %30, %33 : vector<8x1xf32>
    %35 = arith.subf %32, %34 : vector<8x1xf32>
    %cst_15 = arith.constant -0.980066597 : f32
    %36 = vector.broadcast %cst_15 : f32 to vector<8x1xf32>
    %37 = arith.cmpf ogt, %22, %36 : vector<8x1xf32>
    %cst_16 = arith.constant 0.0397338644 : f32
    %38 = vector.broadcast %cst_16 : f32 to vector<8x1xf32>
    %39 = arith.subf %22, %38 : vector<8x1xf32>
    %40 = arith.select %37, %35, %39 : vector<8x1xi1>, vector<8x1xf32>
    %cst_17 = arith.constant 3.000000e+01 : f32
    %41 = vector.broadcast %cst_17 : f32 to vector<8x1xf32>
    %42 = arith.mulf %41, %40 : vector<8x1xf32>
    %43 = vector.shape_cast %42 : vector<8x1xf32> to vector<8x1xf32>
    %44 = vector.broadcast %43 : vector<8x1xf32> to vector<8x128xf32>
    %45 = arith.select %16, %44, %9 : vector<8x128xi1>, vector<8x128xf32>
    %c16_i32 = arith.constant 16 : i32
    %46 = vector.broadcast %c16_i32 : i32 to vector<8x128xi32>
    %47 = arith.cmpi slt, %14, %46 : vector<8x128xi32>
    %cst_18 = arith.constant 0xFF800000 : f32
    %48 = vector.broadcast %cst_18 : f32 to vector<8x128xf32>
    %49 = arith.select %47, %45, %48 : vector<8x128xi1>, vector<8x128xf32>
    %c0_19 = arith.constant 0 : index
    %c0_20 = arith.constant 0 : index
    %50 = vector.load %arg7[%c0_19, %c0_20] : memref<8x1xf32, #tpu.memory_space<vmem>>, vector<8x1xf32>
    %cst_21 = arith.constant dense<0xFF800000> : vector<8xf32>
    %51 = vector.multi_reduction <maximumf>, %49, %cst_21 [1] : vector<8x128xf32> to vector<8xf32>
    %52 = vector.shape_cast %51 : vector<8xf32> to vector<8x1xf32>
    %53 = arith.maximumf %50, %52 : vector<8x1xf32>
    %54 = arith.subf %50, %53 : vector<8x1xf32>
    %55 = math.exp %54 : vector<8x1xf32>
    %c0_22 = arith.constant 0 : index
    %c0_23 = arith.constant 0 : index
    %56 = vector.load %arg8[%c0_22, %c0_23] : memref<8x1xf32, #tpu.memory_space<vmem>>, vector<8x1xf32>
    %57 = arith.mulf %55, %56 : vector<8x1xf32>
    %58 = vector.broadcast %53 : vector<8x1xf32> to vector<8x128xf32>
    %59 = arith.subf %49, %58 : vector<8x128xf32>
    %60 = math.exp %59 : vector<8x128xf32>
    %cst_24 = arith.constant dense<0.000000e+00> : vector<8xf32>
    %61 = vector.multi_reduction <add>, %60, %cst_24 [1] : vector<8x128xf32> to vector<8xf32>
    %62 = vector.shape_cast %61 : vector<8xf32> to vector<8x1xf32>
    %63 = arith.addf %57, %62 : vector<8x1xf32>
    %c0_25 = arith.constant 0 : index
    %c0_26 = arith.constant 0 : index
    %64 = vector.load %arg8[%c0_25, %c0_26] : memref<8x1xf32, #tpu.memory_space<vmem>>, vector<8x1xf32>
    tpu.vector_store %arg8[%c0_25, %c0_26], %63 {strides = array<i32>} : memref<8x1xf32, #tpu.memory_space<vmem>>, vector<8x1xf32>,
    %c0_27 = arith.constant 0 : index
    %c0_28 = arith.constant 0 : index
    %65 = vector.load %arg7[%c0_27, %c0_28] : memref<8x1xf32, #tpu.memory_space<vmem>>, vector<8x1xf32>
    tpu.vector_store %arg7[%c0_27, %c0_28], %53 {strides = array<i32>} : memref<8x1xf32, #tpu.memory_space<vmem>>, vector<8x1xf32>,
    %c128_i32_29 = arith.constant 128 : i32
    %66 = arith.muli %arg1, %c128_i32_29 : i32
    %67 = vector.broadcast %66 : i32 to vector<8x1xi32>
    %68 = arith.cmpi sge, %10, %67 : vector<8x1xi32>
    %c1_i32 = arith.constant 1 : i32
    %69 = arith.addi %arg1, %c1_i32 : i32
    %c128_i32_30 = arith.constant 128 : i32
    %70 = arith.muli %69, %c128_i32_30 : i32
    %71 = vector.broadcast %70 : i32 to vector<8x1xi32>
    %72 = arith.cmpi slt, %10, %71 : vector<8x1xi32>
    %73 = arith.andi %68, %72 : vector<8x1xi1>
    %c0_31 = arith.constant 0 : index
    %c0_32 = arith.constant 0 : index
    %74 = vector.load %arg9[%c0_31, %c0_32] : memref<8x1xf32, #tpu.memory_space<vmem>>, vector<8x1xf32>
    %cst_33 = arith.constant 0.000000e+00 : f32
    %75 = vector.broadcast %cst_33 : f32 to vector<8x1xf32>
    %76 = arith.select %73, %42, %75 : vector<8x1xi1>, vector<8x1xf32>
    %77 = arith.addf %74, %76 : vector<8x1xf32>
    %c0_34 = arith.constant 0 : index
    %c0_35 = arith.constant 0 : index
    %78 = vector.load %arg9[%c0_34, %c0_35] : memref<8x1xf32, #tpu.memory_space<vmem>>, vector<8x1xf32>
    tpu.vector_store %arg9[%c0_34, %c0_35], %77 {strides = array<i32>} : memref<8x1xf32, #tpu.memory_space<vmem>>, vector<8x1xf32>,
    %c0_i32_36 = arith.constant 0 : i32
    %79 = arith.cmpi eq, %arg1, %c0_i32_36 : i32
    %80 = arith.extui %79 : i1 to i32
    %c0_i32_37 = arith.constant 0 : i32
    %81 = arith.cmpi ne, %80, %c0_i32_37 : i32
    scf.if %81 {
      %c0_38 = arith.constant 0 : index
      %c0_39 = arith.constant 0 : index
      %82 = vector.load %arg7[%c0_38, %c0_39] : memref<8x1xf32, #tpu.memory_space<vmem>>, vector<8x1xf32>
      %c0_40 = arith.constant 0 : index
      %c0_41 = arith.constant 0 : index
      %83 = vector.load %arg8[%c0_40, %c0_41] : memref<8x1xf32, #tpu.memory_space<vmem>>, vector<8x1xf32>
      %84 = math.log %83 : vector<8x1xf32>
      %85 = arith.addf %82, %84 : vector<8x1xf32>
      %c0_42 = arith.constant 0 : index
      %c0_43 = arith.constant 0 : index
      %86 = vector.load %arg9[%c0_42, %c0_43] : memref<8x1xf32, #tpu.memory_space<vmem>>, vector<8x1xf32>
      %87 = arith.subf %85, %86 : vector<8x1xf32>
      %c0_44 = arith.constant 0 : index
      %c0_45 = arith.constant 0 : index
      %88 = vector.load %arg5[%c0_44, %c0_45] : memref<8x1xf32, #tpu.memory_space<vmem>>, vector<8x1xf32>
      tpu.vector_store %arg5[%c0_44, %c0_45], %87 {strides = array<i32>} : memref<8x1xf32, #tpu.memory_space<vmem>>, vector<8x1xf32>,
    } else {
    }
    return
  }
  func.func @transform_0(%arg0: i32, %arg1: i32) -> (i32, i32) {
    %c0_i32 = arith.constant 0 : i32
    %c0_i32_0 = arith.constant 0 : i32
    return %arg0, %c0_i32 : i32, i32
  }
  func.func @transform_1(%arg0: i32, %arg1: i32) -> (i32, i32) {
    %c0_i32 = arith.constant 0 : i32
    %c0_i32_0 = arith.constant 0 : i32
    return %arg0, %c0_i32 : i32, i32
  }
  func.func @transform_2(%arg0: i32, %arg1: i32) -> (i32, i32, i32) {
    %c0_i32 = arith.constant 0 : i32
    %c0_i32_0 = arith.constant 0 : i32
    %c0_i32_1 = arith.constant 0 : i32
    return %arg1, %c0_i32, %c0_i32_0 : i32, i32, i32
  }
  func.func @transform_3(%arg0: i32, %arg1: i32) -> (i32, i32) {
    %c0_i32 = arith.constant 0 : i32
    %c0_i32_0 = arith.constant 0 : i32
    return %arg0, %c0_i32 : i32, i32
  }
}

</mosaic_0001>

<bundles_post_ra>
// kernel: tpu_custom_call.1
= control target key start
LH: loop header
LB: loop body
LE: loop exit
PB: predicated region body
PF: predicated region fallthrough
CT: control target
= control target key end

     0   :  { %8 = vsyncpa [#allocation7], 0  ;;  %s259_s12 = smov [#allocation6]   ;;  %s317_s0 = inlined_call_operand.vmem [shape: f32[8,32], index: 0, kind: input, shape index: {}]   ;;  %s318_s1 = inlined_call_operand.vmem [shape: s32[8,1], index: 1, kind: input, shape index: {}]   ;;  %s319_s2 = inlined_call_operand.hbm [shape: bf16[1,32,256], index: 2, kind: input, shape index: {}]   ;;  %s320_s3 = inlined_call_operand.vmem [shape: f32[8,1], index: 3, kind: output, shape index: {}]  }
   0x1   :  { %s18_s13 = sshll.u32 %s259_s12, 4  ;;  %s235_s16 = scalar_lea.hbm %s319_s2, 512  ;;  %s19_s13 = int_to_ptr.vmem [resolvable:$true] %s18_s13 }
   0x2   :  { %p236_p0 = scmp.ne.s32.totalorder %s319_s2, %s235_s16  ;;  %p239_p1 = scmp.lt.u32.totalorder %s235_s16, %s319_s2 }
   0x4   :  { %p241_p2 = pnand %p239_p1, %p236_p0 }
   0x6   :  { %244 = shalt.err (!%p241_p2)
}
   0x7   :  { %s245_s21 = scalar_lea.vmem %s19_s13, 512  ;;  %p250_p4 = scmp.lt.s32.totalorder %s19_s13, %s19_s13 }
   0x8   :  { %p246_p3 = scmp.ne.s32.totalorder %s19_s13, %s245_s21  ;;  %p251_p5 = scmp.lt.s32.totalorder %s245_s21, %s245_s21 }
   0xa   :  { %p252_p6 = por %p251_p5, %p250_p4 }
   0xc   :  { %p253_p7 = pnand %p252_p6, %p246_p3 }
   0xe   :  { %256 = shalt.err (!%p253_p7)
}
   0xf   :  { %s260_s22 = smov 128   ;;  %s261_s23 = smov 8  }
  0x10   :  { %24 = dma.hbm_to_vmem [thread:$0]  %s319_s2, 512, %s19_s13, [#allocation7], %s260_s22, %s260_s22, %s261_s23  }
  0x11   :  { %257 = dma.done.wait [#allocation7], 512  }
  0x12   :  { %258 = vsyncadd [#allocation7], 4294966784  ;;  %v33_v0 = vld [vmem:[%s317_s0] sm:$0xff]  ;;  %vm35_vm0 = vcmask 261120   ;;  %v222_v5 = vld [vmem:[#allocation6 + $0x14] ss:$8 sps:$4 sm:$0xff]   ;;  %v123_v16 = vlaneseq }
  0x13   :  { %v34_v1 = vmul.f32 %v33_v0, %v33_v0  ;;  %v219_v3 = vld [vmem:[#allocation6 + $0x4] ss:$8 sps:$4 sm:$0xff]   ;;  %v221_v4 = vld [vmem:[#allocation6] ss:$8 sps:$4 sm:$0xff]   ;;  %v224_v6 = vld [vmem:[#allocation6 + $0x10] ss:$8 sps:$4 sm:$0xff]  }
  0x14   :  { %79 = vmatprep.subr.bf16.mxu0 %v219_v3  ;;  %v262_v7 = vmov 0   ;;  %v121_v8 = vld [vmem:[%s318_s1] sm:$0xff]  ;;  %vm44_vm1 = vcmask 257024   ;;  %v124_v17 = vand.u32 127, %v123_v16  ;;  %vm46_vm3 = vcmask 7168  }
  0x15   :  { %v36_v2 = vsel %vm35_vm0, %v34_v1, 0.0  ;;  %80 = vmatpush1.bf16.msra.mxu0 %v221_v4  ;;  %111 = vmatprep.mubr.bf16.mxu0 %v262_v7  ;;  %v263_v25 = vmov 0.0   ;;  %v264_v26 = vmov -inf   ;;  %vm179_vm6 = vcmp.ge.s32.totalorder %v121_v8, 0 }
  0x16   :  { %37 = vadd.xlane.f32.xlu0 %v36_v2  ;;  %81 = vmatprep.subr.bf16.mxu0 %v222_v5  ;;  %49 = vst.msk [vmem:[#allocation5] sm:$0xff] %vm46_vm3, %v263_v25  ;;  %48 = vst.msk [vmem:[#allocation4] sm:$0xff] %vm46_vm3, %v263_v25  ;;  %vm183_vm7 = vcmp.lt.s32.totalorder %v121_v8, 128  ;;  %vm154_vm10 = vcmp.lt.s32.totalorder %v124_v17, 16 }
  0x17   :  { %217 = vset.pattern.permute.xlu0 %v262_v7  ;;  %218 = vset.pattern.permute.xlu1 %v262_v7  ;;  %47 = vst.msk [vmem:[#allocation3] sm:$0xff] %vm46_vm3, %v264_v26  ;;  %vm184_vm9 = vmand %vm179_vm6, %vm183_vm7 }
  0x19   :  { %82 = vmatpush1.bf16.msra.mxu0 %v224_v6 }
  0x1d   :  { %v185_v44 = vld [vmem:[#allocation5] sm:$0xff]  ;;  %v163_v59 = vld [vmem:[#allocation4] sm:$0xff] }
  0x1e   :  { %v156_v49 = vld [vmem:[#allocation3] sm:$0xff] }
  0x2c   :  { %128 = vperm.xlu0 %217, %v121_v8  }
  0xa3   :  { %v38_v9 = vpop.xlane.xlu0 %37 }
  0xa4   :  { %v39_v10 = vmax.f32 %v38_v9, 1e-24 }
  0xa6   :  { %225 = vrsqrt.f32 %v39_v10 }
  0xab   :  { %v129_v18 = vpop.permute.xlu0 %128 }
  0xac   :  { %vm130_vm2 = vcmp.eq.s32.totalorder %v124_v17, %v129_v18 }
  0xb0   :  { %v226_v11 = vpop.eup %225 }
  0xb1   :  { %v41_v12 = vmul.f32 30.0, %v226_v11 }
  0xb3   :  { %v42_v13 = vmul.f32 %v41_v12, %v33_v0 }
  0xb5   :  { %v43_v14 = vpack.c.bf16 %v42_v13, %v42_v13 }
  0xb7   :  { %45 = vst.msk [vmem:[#allocation2] sm:$0xf] %vm44_vm1, %v43_v14 }
  0xbe   :  { %v50_v15 = vld [vmem:[#allocation2] sm:$0xf] }
  0xbf   :  { %209 = vmatmul.mubr.msk.bf16.vlgmr.msra.gmra.mrb[0].mxu0 %vm35_vm0, %v50_v15 }
 0x192   :  { %v113_v19 = vpop.f32.mrb[0].mxu0 }
 0x193   :  { %v115_v20 = vpop.f32.mrb[1].mxu0 }
 0x194   :  { %v120_v21 = vmax.f32 %v113_v19, %v115_v20  ;;  %v117_v22 = vpop.f32.mrb[2].mxu0 }
 0x195   :  { %v118_v23 = vpop.f32.mrb[3].mxu0 }
 0x196   :  { %v131_v24 = vsel %vm130_vm2, %v120_v21, 0.0 }
 0x197   :  { %132 = vadd.xlane.f32.xlu1 %v131_v24 }
 0x224   :  { %v133_v27 = vpop.xlane.xlu1 %132 }
 0x225   :  { %v134_v28 = vmul.f32 0.033333335, %v133_v27 }
 0x227   :  { %v135_v29 = vmul.f32 %v134_v28, %v134_v28  ;;  %v146_v38 = vmul.f32 0.9800666, %v134_v28  ;;  %v210_v41 = vadd.f32 -0.039733864, %v134_v28  ;;  %vm149_vm8 = vcmp.gt.f32.partialorder %v134_v28, -0.9800666 }
 0x229   :  { %v136_v30 = vsub.f32 1.0, %v135_v29 }
 0x22b   :  { %v137_v31 = vmax.f32 %v136_v30, 0.0 }
 0x22d   :  { %v138_v32 = vmin.f32 %v137_v31, 1.0 }
 0x22f   :  { %227 = vrsqrt.f32 %v138_v32  ;;  %vm141_vm4 = vcmp.eq.f32.partialorder %v138_v32, inf  ;;  %v144_v35 = vand.u32 2147483648, %v138_v32  ;;  %vm143_vm5 = vcmp.eq.f32.partialorder %v138_v32, 0.0 }
 0x239   :  { %v228_v33 = vpop.eup %227 }
 0x23a   :  { %v140_v34 = vmul.f32 %v228_v33, %v138_v32 }
 0x23c   :  { %v142_v36 = vsel %vm141_vm4, %v138_v32, %v140_v34 }
 0x23d   :  { %v145_v37 = vsel %vm143_vm5, %v144_v35, %v142_v36 }
 0x23e   :  { %v147_v39 = vmul.f32 0.19866933, %v145_v37 }
 0x240   :  { %v148_v40 = vsub.f32 %v146_v38, %v147_v39 }
 0x242   :  { %v151_v42 = vsel %vm149_vm8, %v148_v40, %v210_v41 }
 0x243   :  { %v152_v43 = vmul.f32 30.0, %v151_v42 }
 0x245   :  { %v153_v45 = vsel %vm130_vm2, %v152_v43, %v120_v21  ;;  %v186_v46 = vsel %vm184_vm9, %v152_v43, 0.0 }
 0x246   :  { %v155_v47 = vsel %vm154_vm10, %v153_v45, -inf  ;;  %v187_v48 = vadd.f32 %v186_v46, %v185_v44 }
 0x247   :  { %157 = vmax.xlane.f32.xlu1 %v155_v47 }
 0x248   :  { %188 = vst.msk [vmem:[#allocation5] sm:$0xff] %vm46_vm3, %v187_v48 }
 0x24f   :  { %v197_v4 = vld [vmem:[#allocation5] sm:$0xff] }
 0x2d4   :  { %v158_v50 = vpop.xlane.xlu1 %157 }
 0x2d5   :  { %v159_v51 = vmax.f32 %v156_v49, %v158_v50 }
 0x2d7   :  { %v160_v52 = vsub.f32 %v156_v49, %v159_v51  ;;  %178 = vst.msk [vmem:[#allocation3] sm:$0xff] %vm46_vm3, %v159_v51  ;;  %167 = vperm.xlu1 %218, %v159_v51  }
 0x2d9   :  { %v161_v57 = vmul.f32 1.442695, %v160_v52 }
 0x2de   :  { %v192_v2 = vld [vmem:[#allocation3] sm:$0xff] }
 0x356   :  { %v168_v53 = vpop.permute.xlu1 %167 }
 0x357   :  { %v170_v54 = vsub.f32 %v155_v47, %v168_v53 }
 0x359   :  { %v171_v55 = vmul.f32 1.442695, %v170_v54 }
 0x35b   :  { %229 = vpow2.f32 %v171_v55 }
 0x35c   :  { %231 = vpow2.f32 %v161_v57 }
 0x365   :  { %v230_v56 = vpop.eup %229 }
 0x366   :  { %173 = vadd.xlane.f32.xlu1 %v230_v56  ;;  %v232_v58 = vpop.eup %231 }
 0x367   :  { %v164_v60 = vmul.f32 %v232_v58, %v163_v59 }
 0x3f3   :  { %v174_v61 = vpop.xlane.xlu1 %173 }
 0x3f4   :  { %v175_v62 = vadd.f32 %v174_v61, %v164_v60 }
 0x3f6   :  { %177 = vst.msk [vmem:[#allocation4] sm:$0xff] %vm46_vm3, %v175_v62 }
 0x3fd   :  { %v193_v63 = vld [vmem:[#allocation4] sm:$0xff] }
 0x3fe   :  { %233 = vlog2.f32 %v193_v63 }
 0x408   :  { %v234_v0 = vpop.eup %233 }
 0x409   :  { %v195_v1 = vmul.f32 0.6931472, %v234_v0 }
 0x40b   :  { %v196_v3 = vadd.f32 %v195_v1, %v192_v2 }
 0x40d   :  { %v198_v5 = vsub.f32 %v196_v3, %v197_v4 }
 0x40f   :  { %199 = vst.msk [vmem:[%s320_s3] sm:$0xff] %vm46_vm3, %v198_v5 }
 0x410   :  { %204 = vsyncpa [#allocation7], 1 }

</bundles_post_ra>
